<compile_context>
chip_gen: v7x
topology: tpu7x:2x2x1
jax: 0.10.0
libtpu: 0.0.40
codegen_flags: <defaults>
</compile_context>

<pallas_src>
import functools

import jax
import jax.numpy as jnp
from jax.experimental import pallas as pl
from jax.experimental.pallas import tpu as pltpu


def _round_up(x, m):
    return ((x + m - 1) // m) * m


def conv_norm_layer(x_nchw, weight, gamma, beta, running_mean, running_var,
                    *, stride=1, eps=1e-5, block_oh=None):
    """Conv2D (padding=(k-1)//2, groups=1, no conv bias) + BatchNorm2D (eval).

    x_nchw : (N, Cin, H, W)            (PyTorch layout)
    weight : (Cout, Cin, KH, KW)       (PyTorch OIHW layout)
    Returns (N, Cout, OH, OW) in x_nchw.dtype.
    """
    N, Cin, H, W = x_nchw.shape
    Cout, _, KH, KW = weight.shape
    s = int(stride)
    pad_h = (KH - 1) // 2
    pad_w = (KW - 1) // 2
    OH = (H + 2 * pad_h - KH) // s + 1
    OW = (W + 2 * pad_w - KW) // s + 1

    # ------------------------- tile-size selection -------------------------
    # Output channels: lane-dense padding; prefer >=256-wide tiles (v6e/v7x
    # 2x256 MXU); 128 already saturates v5e's 4x128 MXU.
    if Cout <= 128:
        cout_pad, tco = 128, 128
    else:
        cout_pad = _round_up(Cout, 256)
        tco = 512 if cout_pad % 512 == 0 else 256
    n_co = cout_pad // tco

    # Taps folded into the channel (lane) axis.
    if s == 1:
        n_taps, kc = KH, KW * Cin          # KH shift-and-accumulate dots
    else:
        n_taps, kc = 1, KH * KW * Cin      # fully folded: a single dot
    kc_pad = _round_up(kc, 128)            # VMEM lane padding (for the budget)

    ow_t = _round_up(OW, 8)                # sublane-aligned output width

    def _step_bytes(t_oh):
        rows_in = t_oh + (KH - 1 if s == 1 else 0)
        in_b = _round_up(rows_in * ow_t, 16) * kc_pad * 2 * 2   # 2 pipeline bufs
        out_b = t_oh * ow_t * tco * 4 * 2
        acc_b = t_oh * ow_t * tco * 4
        w_b = n_taps * _round_up(kc, 16) * tco * 2 * 2
        return in_b + out_b + acc_b + w_b

    if block_oh is not None:
        t_oh = int(block_oh)
    else:
        t_oh = max(8, min(64, _round_up(OH, 8)))
        while t_oh > 8 and _step_bytes(t_oh) > 40 * 1024 * 1024:
            t_oh -= 8
    oh_t = _round_up(OH, t_oh)
    n_oh = oh_t // t_oh
    m_t = t_oh * ow_t                      # rows of each per-tile matmul
    g_steps = N * n_oh

    # --------------- wrapper: layout prep (bf16 gather/pad pass) -----------
    x = jnp.transpose(x_nchw, (0, 2, 3, 1)).astype(jnp.bfloat16)   # NHWC

    if s == 1:
        rows_in = t_oh + KH - 1
        hp = oh_t + KH - 1
        wp = ow_t + KW - 1
        xp = jnp.pad(x, ((0, 0),
                         (pad_h, max(0, hp - H - pad_h)),
                         (pad_w, max(0, wp - W - pad_w)),
                         (0, 0)))
        # Fold the KW taps into the channel axis: lane dim becomes KW*Cin.
        cols = (jnp.arange(ow_t)[:, None] + jnp.arange(KW)[None, :]).reshape(-1)
        xk = xp[:, :, cols, :].reshape(N, xp.shape[1], ow_t, kc)
        # Non-overlapping row slabs with the (KH-1)-row halo duplicated.
        rows = jnp.arange(n_oh)[:, None] * t_oh + jnp.arange(rows_in)[None, :]
        slabs = xk[:, rows].reshape(g_steps, rows_in * ow_t, kc)
    else:
        rows_in = t_oh
        hp = (oh_t - 1) * s + KH
        wp = (ow_t - 1) * s + KW
        xp = jnp.pad(x, ((0, 0),
                         (pad_h, max(0, hp - H - pad_h)),
                         (pad_w, max(0, wp - W - pad_w)),
                         (0, 0)))
        # Fully fold KH and KW taps (wrapper space-to-patches; no in-kernel
        # strided slice).  Blow-up is KH*KW/s^2 (<= 2.25 for 3x3/s2).
        r_idx = jnp.arange(oh_t)[:, None] * s + jnp.arange(KH)[None, :]
        c_idx = jnp.arange(ow_t)[:, None] * s + jnp.arange(KW)[None, :]
        p = xp[:, r_idx]                        # (N, oh_t, KH, Wp, Cin)
        p = p[:, :, :, c_idx, :]                # (N, oh_t, KH, ow_t, KW, Cin)
        p = jnp.transpose(p, (0, 1, 3, 2, 4, 5))
        slabs = p.reshape(g_steps, t_oh * ow_t, kc)

    # Conv weight -> (n_taps, kc, cout_pad) bf16, lane order (kh, kw, cin)
    # matching the folded input; BN scale is NOT baked in (f32 epilogue).
    w_t = jnp.transpose(weight, (2, 3, 1, 0)).astype(jnp.float32)  # KH,KW,Ci,Co
    w_t = jnp.pad(w_t, ((0, 0), (0, 0), (0, 0), (0, cout_pad - Cout)))
    w_mat = w_t.reshape(n_taps, kc, cout_pad).astype(jnp.bfloat16)

    # Eval-mode BN as per-channel (scale, bias), applied in f32 after the MXU.
    inv_std = 1.0 / jnp.sqrt(running_var.astype(jnp.float32) + eps)
    scale = gamma.astype(jnp.float32) * inv_std
    bias = beta.astype(jnp.float32) - running_mean.astype(jnp.float32) * scale
    affine = jnp.stack([jnp.pad(scale, (0, cout_pad - Cout)),
                        jnp.pad(bias, (0, cout_pad - Cout))])      # (2, cout_pad)

    # ----------------------------- kernel ----------------------------------
    def kernel(x_ref, w_ref, a_ref, o_ref, acc_ref):
        # x_ref : (1, rows_in*ow_t, kc) bf16   image slab (taps folded in lanes)
        # w_ref : (n_taps, kc, tco)     bf16
        # a_ref : (2, tco)              f32    [scale; bias]
        # o_ref : (1, m_t, tco)         f32
        # acc   : (m_t, tco)            f32    VMEM scratch accumulator
        for t in range(n_taps):
            win = x_ref[0, t * ow_t:t * ow_t + m_t, :]            # (m_t, kc)
            part = jnp.dot(win, w_ref[t], preferred_element_type=jnp.float32)
            if t == 0:
                acc_ref[...] = part
            else:
                acc_ref[...] += part
        o_ref[0] = (acc_ref[...] * a_ref[0:1, :]
                    + a_ref[1:2, :]).astype(o_ref.dtype)

    # Honest cost estimate: each slab is DMA'd once per (n, oh-tile) because
    # n_co is the innermost grid axis; weights re-fetched only if n_co > 1.
    flops = 2 * N * OH * OW * KH * KW * Cin * Cout
    bytes_accessed = (slabs.size * 2
                      + w_mat.size * 2 * (g_steps if n_co > 1 else 1)
                      + affine.size * 4
                      + g_steps * m_t * cout_pad * 4)

    out = pl.pallas_call(
        kernel,
        out_shape=jax.ShapeDtypeStruct((g_steps, m_t, cout_pad), jnp.float32),
        grid_spec=pltpu.PrefetchScalarGridSpec(
            num_scalar_prefetch=0,
            grid=(g_steps, n_co),              # n_co innermost: slab reuse
            in_specs=[
                pl.BlockSpec((1, rows_in * ow_t, kc), lambda g, c: (g, 0, 0)),
                pl.BlockSpec((n_taps, kc, tco), lambda g, c: (0, 0, c)),
                pl.BlockSpec((2, tco), lambda g, c: (0, c)),
            ],
            out_specs=pl.BlockSpec((1, m_t, tco), lambda g, c: (g, 0, c)),
            scratch_shapes=[pltpu.VMEM((m_t, tco), jnp.float32)],
        ),
        compiler_params=pltpu.CompilerParams(
            dimension_semantics=("parallel", "arbitrary"),
            vmem_limit_bytes=56 * 1024 * 1024,   # headroom under v7x's 64 MiB
        ),
        cost_estimate=pl.CostEstimate(
            flops=flops, transcendentals=0, bytes_accessed=bytes_accessed),
    )(slabs, w_mat, affine)

    # Drop spatial/channel padding, restore NCHW (module API).
    out = out.reshape(N, oh_t, ow_t, cout_pad)[:, :OH, :OW, :Cout]
    return jnp.transpose(out, (0, 3, 1, 2)).astype(x_nchw.dtype)


if __name__ == "__main__":
    key = jax.random.PRNGKey(0)
    k1, k2, k3, k4, k5, k6 = jax.random.split(key, 6)

    # Small shapes consistent with the module.
    N, Cin, H, W = 2, 4, 16, 16
    Cout, KH, KW = 8, 3, 3
    stride = 1

    x = jax.random.normal(k1, (N, Cin, H, W), dtype=jnp.float32)
    # Conv weight init Normal(0, 0.01); bias_on=False -> no conv bias.
    weight = 0.01 * jax.random.normal(k2, (Cout, Cin, KH, KW), dtype=jnp.float32)
    # BatchNorm2D (eval-mode) parameters / running statistics.
    gamma = 1.0 + 0.1 * jax.random.normal(k3, (Cout,), dtype=jnp.float32)
    beta = 0.1 * jax.random.normal(k4, (Cout,), dtype=jnp.float32)
    running_mean = 0.05 * jax.random.normal(k5, (Cout,), dtype=jnp.float32)
    running_var = 1.0 + 0.1 * jax.random.uniform(k6, (Cout,), dtype=jnp.float32)

    # block_oh=8 exercises the OH-tiled / halo-slab path (n_oh=2, grid=(4,1)).
    fn = jax.jit(functools.partial(conv_norm_layer, stride=stride, block_oh=8))
    out = jax.block_until_ready(
        fn(x, weight, gamma, beta, running_mean, running_var))

    # Pure-JAX f32 reference (conv + eval-mode BN).
    ref_conv = jax.lax.conv_general_dilated(
        x, weight, window_strides=(stride, stride),
        padding=[((KH - 1) // 2, (KH - 1) // 2), ((KW - 1) // 2, (KW - 1) // 2)],
        dimension_numbers=("NCHW", "OIHW", "NCHW"))
    inv_std = 1.0 / jnp.sqrt(running_var + 1e-5)
    ref = (ref_conv - running_mean[None, :, None, None]) * \
          (gamma * inv_std)[None, :, None, None] + beta[None, :, None, None]

    assert out.shape == (N, Cout, H, W), out.shape
    max_err = float(jnp.max(jnp.abs(out - ref)))
    # bf16 matmul operands -> relaxed tolerance vs the f32 reference.
    assert jnp.allclose(out, ref, atol=1e-2, rtol=1e-2), \
        f"mismatch vs reference (max abs err {max_err})"

    print("KERNEL_OK")
</pallas_src>

<mosaic_0001>
module attributes {stable_mosaic.version = 11 : i64} {
  func.func @kernel(%arg0: i32, %arg1: i32, %arg2: memref<1x160x12xbf16, #tpu.memory_space<vmem>>, %arg3: memref<3x12x128xbf16, #tpu.memory_space<vmem>>, %arg4: memref<2x128xf32, #tpu.memory_space<vmem>>, %arg5: memref<1x128x128xf32, #tpu.memory_space<vmem>>, %arg6: memref<128x128xf32, #tpu.memory_space<vmem>>) attributes {dimension_semantics = [#tpu.dimension_semantics<parallel>, #tpu.dimension_semantics<arbitrary>], iteration_bounds = array<i64: 4, 1>, scalar_prefetch = 0 : i64, scratch_operands = 1 : i64, tpu.core_type = #tpu.core_type<tc>, window_params = [{transform_indices = @transform_0, window_bounds = array<i64: 1, 160, 12>}, {transform_indices = @transform_1, window_bounds = array<i64: 3, 12, 128>}, {transform_indices = @transform_2, window_bounds = array<i64: 2, 128>}, {transform_indices = @transform_3, window_bounds = array<i64: 1, 128, 128>}]} {
    %c0 = arith.constant 0 : index
    %c0_0 = arith.constant 0 : index
    %c0_1 = arith.constant 0 : index
    %0 = vector.load %arg2[%c0, %c0_0, %c0_1] : memref<1x160x12xbf16, #tpu.memory_space<vmem>>, vector<1x128x12xbf16>
    %1 = vector.shape_cast %0 : vector<1x128x12xbf16> to vector<128x12xbf16>
    %c0_2 = arith.constant 0 : index
    %c0_3 = arith.constant 0 : index
    %c0_4 = arith.constant 0 : index
    %2 = vector.load %arg3[%c0_2, %c0_3, %c0_4] : memref<3x12x128xbf16, #tpu.memory_space<vmem>>, vector<1x12x128xbf16>
    %3 = vector.shape_cast %2 : vector<1x12x128xbf16> to vector<12x128xbf16>
    %cst = arith.constant dense<0.000000e+00> : vector<128x128xf32>
    %4 = tpu.matmul %1, %3, %cst {dimension_numbers = #tpu.dot_dimension_numbers<[1], [0], [0], [1], [0, 0, 1, 1], [], []>} : vector<128x12xbf16>, vector<12x128xbf16>, vector<128x128xf32> -> vector<128x128xf32>
    %c0_5 = arith.constant 0 : index
    %c0_6 = arith.constant 0 : index
    %5 = vector.load %arg6[%c0_5, %c0_6] : memref<128x128xf32, #tpu.memory_space<vmem>>, vector<128x128xf32>
    tpu.vector_store %arg6[%c0_5, %c0_6], %4 {strides = array<i32>} : memref<128x128xf32, #tpu.memory_space<vmem>>, vector<128x128xf32>,
    %c0_7 = arith.constant 0 : index
    %c16 = arith.constant 16 : index
    %c0_8 = arith.constant 0 : index
    %6 = vector.load %arg2[%c0_7, %c16, %c0_8] : memref<1x160x12xbf16, #tpu.memory_space<vmem>>, vector<1x128x12xbf16>
    %7 = vector.shape_cast %6 : vector<1x128x12xbf16> to vector<128x12xbf16>
    %c1 = arith.constant 1 : index
    %c0_9 = arith.constant 0 : index
    %c0_10 = arith.constant 0 : index
    %8 = vector.load %arg3[%c1, %c0_9, %c0_10] : memref<3x12x128xbf16, #tpu.memory_space<vmem>>, vector<1x12x128xbf16>
    %9 = vector.shape_cast %8 : vector<1x12x128xbf16> to vector<12x128xbf16>
    %cst_11 = arith.constant dense<0.000000e+00> : vector<128x128xf32>
    %10 = tpu.matmul %7, %9, %cst_11 {dimension_numbers = #tpu.dot_dimension_numbers<[1], [0], [0], [1], [0, 0, 1, 1], [], []>} : vector<128x12xbf16>, vector<12x128xbf16>, vector<128x128xf32> -> vector<128x128xf32>
    %c0_12 = arith.constant 0 : index
    %c0_13 = arith.constant 0 : index
    %11 = vector.load %arg6[%c0_12, %c0_13] : memref<128x128xf32, #tpu.memory_space<vmem>>, vector<128x128xf32>
    %12 = arith.addf %11, %10 : vector<128x128xf32>
    %c0_14 = arith.constant 0 : index
    %c0_15 = arith.constant 0 : index
    %13 = vector.load %arg6[%c0_14, %c0_15] : memref<128x128xf32, #tpu.memory_space<vmem>>, vector<128x128xf32>
    tpu.vector_store %arg6[%c0_14, %c0_15], %12 {strides = array<i32>} : memref<128x128xf32, #tpu.memory_space<vmem>>, vector<128x128xf32>,
    %c0_16 = arith.constant 0 : index
    %c32 = arith.constant 32 : index
    %c0_17 = arith.constant 0 : index
    %14 = vector.load %arg2[%c0_16, %c32, %c0_17] : memref<1x160x12xbf16, #tpu.memory_space<vmem>>, vector<1x128x12xbf16>
    %15 = vector.shape_cast %14 : vector<1x128x12xbf16> to vector<128x12xbf16>
    %c2 = arith.constant 2 : index
    %c0_18 = arith.constant 0 : index
    %c0_19 = arith.constant 0 : index
    %16 = vector.load %arg3[%c2, %c0_18, %c0_19] : memref<3x12x128xbf16, #tpu.memory_space<vmem>>, vector<1x12x128xbf16>
    %17 = vector.shape_cast %16 : vector<1x12x128xbf16> to vector<12x128xbf16>
    %cst_20 = arith.constant dense<0.000000e+00> : vector<128x128xf32>
    %18 = tpu.matmul %15, %17, %cst_20 {dimension_numbers = #tpu.dot_dimension_numbers<[1], [0], [0], [1], [0, 0, 1, 1], [], []>} : vector<128x12xbf16>, vector<12x128xbf16>, vector<128x128xf32> -> vector<128x128xf32>
    %c0_21 = arith.constant 0 : index
    %c0_22 = arith.constant 0 : index
    %19 = vector.load %arg6[%c0_21, %c0_22] : memref<128x128xf32, #tpu.memory_space<vmem>>, vector<128x128xf32>
    %20 = arith.addf %19, %18 : vector<128x128xf32>
    %c0_23 = arith.constant 0 : index
    %c0_24 = arith.constant 0 : index
    %21 = vector.load %arg6[%c0_23, %c0_24] : memref<128x128xf32, #tpu.memory_space<vmem>>, vector<128x128xf32>
    tpu.vector_store %arg6[%c0_23, %c0_24], %20 {strides = array<i32>} : memref<128x128xf32, #tpu.memory_space<vmem>>, vector<128x128xf32>,
    %c0_25 = arith.constant 0 : index
    %c0_26 = arith.constant 0 : index
    %22 = vector.load %arg6[%c0_25, %c0_26] : memref<128x128xf32, #tpu.memory_space<vmem>>, vector<128x128xf32>
    %c0_27 = arith.constant 0 : index
    %c0_28 = arith.constant 0 : index
    %23 = vector.load %arg4[%c0_27, %c0_28] : memref<2x128xf32, #tpu.memory_space<vmem>>, vector<1x128xf32>
    %24 = vector.broadcast %23 : vector<1x128xf32> to vector<128x128xf32>
    %25 = arith.mulf %22, %24 : vector<128x128xf32>
    %c1_29 = arith.constant 1 : index
    %c0_30 = arith.constant 0 : index
    %26 = vector.load %arg4[%c1_29, %c0_30] : memref<2x128xf32, #tpu.memory_space<vmem>>, vector<1x128xf32>
    %27 = vector.broadcast %26 : vector<1x128xf32> to vector<128x128xf32>
    %28 = arith.addf %25, %27 : vector<128x128xf32>
    %c0_31 = arith.constant 0 : index
    %c0_32 = arith.constant 0 : index
    %c0_33 = arith.constant 0 : index
    %29 = vector.load %arg5[%c0_31, %c0_32, %c0_33] : memref<1x128x128xf32, #tpu.memory_space<vmem>>, vector<1x128x128xf32>
    %30 = vector.shape_cast %29 : vector<1x128x128xf32> to vector<128x128xf32>
    %31 = vector.shape_cast %28 : vector<128x128xf32> to vector<1x128x128xf32>
    tpu.vector_store %arg5[%c0_31, %c0_32, %c0_33], %31 {strides = array<i32>} : memref<1x128x128xf32, #tpu.memory_space<vmem>>, vector<1x128x128xf32>,
    return
  }
  func.func @transform_0(%arg0: i32, %arg1: i32) -> (i32, i32, i32) {
    %c0_i32 = arith.constant 0 : i32
    %c0_i32_0 = arith.constant 0 : i32
    %c0_i32_1 = arith.constant 0 : i32
    return %arg0, %c0_i32, %c0_i32_0 : i32, i32, i32
  }
  func.func @transform_1(%arg0: i32, %arg1: i32) -> (i32, i32, i32) {
    %c0_i32 = arith.constant 0 : i32
    %c0_i32_0 = arith.constant 0 : i32
    %c0_i32_1 = arith.constant 0 : i32
    return %c0_i32, %c0_i32_0, %arg1 : i32, i32, i32
  }
  func.func @transform_2(%arg0: i32, %arg1: i32) -> (i32, i32) {
    %c0_i32 = arith.constant 0 : i32
    %c0_i32_0 = arith.constant 0 : i32
    return %c0_i32, %arg1 : i32, i32
  }
  func.func @transform_3(%arg0: i32, %arg1: i32) -> (i32, i32, i32) {
    %c0_i32 = arith.constant 0 : i32
    %c0_i32_0 = arith.constant 0 : i32
    return %arg0, %c0_i32, %arg1 : i32, i32, i32
  }
}

</mosaic_0001>

<bundles_post_ra>
// kernel: conv_norm_layer.1
= control target key start
LH: loop header
LB: loop body
LE: loop exit
PB: predicated region body
PF: predicated region fallthrough
CT: control target
= control target key end

     0   :  { %s1370_s12 = smov 0   ;;  %s1372_s13 = smov 0   ;;  %s1533_s0 = inlined_call_operand.vmem [shape: bf16[4,160,12], index: 0, kind: input, shape index: {}]   ;;  %s1534_s1 = inlined_call_operand.vmem [shape: bf16[3,12,128], index: 1, kind: input, shape index: {}]   ;;  %s1535_s2 = inlined_call_operand.vmem [shape: f32[2,128], index: 2, kind: input, shape index: {}]   ;;  %s1536_s3 = inlined_call_operand.vmem [shape: f32[4,128,128], index: 3, kind: output, shape index: {}]  }
   0x1   :  { %s1374_s14 = smov 0  }
   0x2 LB: > { %s25_s15 = sadd.s32 1, %s1344_s13  ;;  %p1091_p0 = scmp.ge.s32.totalorder %s1348_s14, 1  ;;  %s1348_s14 = sphi %s1374_s14, %s13_s14   ;;  %s1344_s13 = sphi %s1372_s13, %s1538_s13   ;;  %s1340_s12 = sphi %s1370_s12, %s1537_s12  }
   0x3   : > { %p27_p1 = scmp.ge.s32.totalorder %s25_s15, 4  ;;  %p169_p2 = scmp.lt.s32.totalorder %s1348_s14, 5 }
   0x5   : > { %s1540_s15 = smov (%p27_p1, %s25_s15), 0  ;;  %p170_p3 = pnand %p1091_p0, %p169_p2 }
   0x6   : > { %v1299_v0 = vld [vmem:[%s1534_s1] sm:$0x3f] (!%p170_p3)   ;;  %vm314_vm0 = vcmask (!%p170_p3), 1045504   ;;  %p204_p4 = scmp.lt.s32.totalorder (!%p170_p3), %s1340_s12, 3  ;;  %v1300_v1 = vld [vmem:[%s1534_s1 + $0x8] sm:$0x3f] (!%p170_p3)  }
   0x7   : > { %173 = sbr.rel (%p170_p3) target bundleno = 282 (0x11a), region = 32  ;;  %1270 = vmatprep.subr.msk.bf16.mxu1 (!%p170_p3), %vm314_vm0, %v1299_v0  ;;  %v316_v2 = vsel (!%p170_p3), %vm314_vm0, %v1299_v0, 0  ;;  %v1303_v3 = vld [vmem:[%s1534_s1 + $0x10] sm:$0x3f] (!%p170_p3)   ;;  %1271 = vmatprep.subr.msk.bf16.mxu0 (!%p170_p3), %vm314_vm0, %v1300_v1  ;;  %v520_v4 = vsel (!%p170_p3), %vm314_vm0, %v1300_v1, 0  ;;  %vm289_vm1 = vcmask (!%p170_p3), 97280  }
   0x8   : > { %1183 = vmatpush3.bf16.msra.mxu1 (!%p170_p3), %v316_v2  ;;  %1201 = vmatpush3.bf16.msra.mxu0 (!%p170_p3), %v520_v4  ;;  %v756_v9 = vsel (!%p170_p3), %vm314_vm0, %v1303_v3, 0  ;;  %v1463_v39 = vld [vmem:[%s1535_s2] ss:$0 sm:$0xff] (!%p170_p3)  ;;  %v1469_v42 = vld [vmem:[%s1535_s2 + $0x1] ss:$0 sm:$0xff] (!%p170_p3) }
   0x9   : > { %1272 = vmatprep.subr.msk.bf16.mxu1 (!%p170_p3), %vm314_vm0, %v1300_v1  ;;  %1273 = vmatprep.subr.msk.bf16.mxu0 (!%p170_p3), %vm314_vm0, %v1303_v3 }
   0xe   : > { %s1542_s12 = smov (!%p204_p4, %s1340_s12), 3 }
   0xf   : > { %s1274_s22 = smul.u32 80, %s1542_s12  ;;  %s1154_s28 = sshll.u32 %s1542_s12, 7 }
  0x10   : > { %s1475_s6 = scalar_lea.vmem %s1536_s3, %s1154_s28 }
  0x11   : > { %s1409_s25 = scalar_lea.vmem %s1533_s0, %s1274_s22 }
  0x12   : > { %v1301_v5 = vld [vmem:[%s1409_s25] sm:$0xff]   ;;  %v1302_v6 = vld [vmem:[%s1409_s25 + $0x8] sm:$0xff]   ;;  %v1305_v8 = vld [vmem:[%s1409_s25 + $0x10] sm:$0xff]  }
  0x13   : > { %1184 = vmatprep.mubr.msk.bf16.mxu1 %vm289_vm1, %v1301_v5  ;;  %v1304_v7 = vld [vmem:[%s1409_s25 + $0x8] sm:$0xff]   ;;  %1202 = vmatprep.mubr.msk.bf16.mxu0 %vm289_vm1, %v1302_v6  ;;  %v1306_v10 = vld [vmem:[%s1409_s25 + $0x10] sm:$0xff]   ;;  %v1307_v11 = vld [vmem:[%s1409_s25 + $0x18] sm:$0xff]  }
  0x14   : > { %1185 = vmatmul.mubr.msk.bf16.vlgmr.msra.gmra.mrb[0].mxu1 %vm289_vm1, %v1304_v7  ;;  %1203 = vmatmul.mubr.msk.bf16.vlgmr.msra.gmra.mrb[0].mxu0 %vm289_vm1, %v1305_v8  ;;  %v1308_v12 = vld [vmem:[%s1409_s25 + $0x18] sm:$0xff]   ;;  %v1309_v13 = vld [vmem:[%s1409_s25 + $0x20] sm:$0xff]   ;;  %v1311_v15 = vld [vmem:[%s1409_s25 + $0x10] sm:$0xff]  }
  0x15   : > { %1237 = vmatpush3.bf16.msra.mxu1 %v520_v4  ;;  %1219 = vmatpush3.bf16.msra.mxu0 %v756_v9  ;;  %v1310_v14 = vld [vmem:[%s1409_s25 + $0x20] sm:$0xff]   ;;  %v1312_v16 = vld [vmem:[%s1409_s25 + $0x28] sm:$0xff]   ;;  %v1313_v17 = vld [vmem:[%s1409_s25 + $0x18] sm:$0xff]  }
  0x16   : > { %1188 = vmatprep.mubr.msk.bf16.mxu1 %vm289_vm1, %v1306_v10  ;;  %1206 = vmatprep.mubr.msk.bf16.mxu0 %vm289_vm1, %v1307_v11  ;;  %v1314_v18 = vld [vmem:[%s1409_s25 + $0x30] sm:$0xff]   ;;  %v1315_v19 = vld [vmem:[%s1409_s25 + $0x20] sm:$0xff]   ;;  %v1316_v20 = vld [vmem:[%s1409_s25 + $0x38] sm:$0xff]  }
  0x17   : > { %v1317_v21 = vld [vmem:[%s1409_s25 + $0x28] sm:$0xff]   ;;  %v1319_v23 = vld [vmem:[%s1409_s25 + $0x30] sm:$0xff]   ;;  %v1321_v25 = vld [vmem:[%s1409_s25 + $0x38] sm:$0xff]  }
  0x18   : > { %v1318_v22 = vld [vmem:[%s1409_s25 + $0x28] sm:$0xff]   ;;  %v1320_v24 = vld [vmem:[%s1409_s25 + $0x30] sm:$0xff]   ;;  %v1322_v26 = vld [vmem:[%s1409_s25 + $0x38] sm:$0xff]  }
  0x19   : > { %v1323_v27 = vld [vmem:[%s1409_s25 + $0x40] sm:$0xff]   ;;  %v1325_v29 = vld [vmem:[%s1409_s25 + $0x48] sm:$0xff]  }
  0x1a   : > { %v1324_v28 = vld [vmem:[%s1409_s25 + $0x40] sm:$0xff]  }
  0x1c   : > { %1189 = vmatmul.mubr.msk.bf16.gmra.mrb[4].mxu1 %vm289_vm1, %v1308_v12  ;;  %1207 = vmatmul.mubr.msk.bf16.gmra.mrb[4].mxu0 %vm289_vm1, %v1309_v13 }
  0x1d   : > { %1192 = vmatprep.mubr.msk.bf16.mxu1 %vm289_vm1, %v1310_v14  ;;  %1220 = vmatprep.mubr.msk.bf16.mxu0 %vm289_vm1, %v1311_v15 }
  0x24   : > { %1193 = vmatmul.mubr.msk.bf16.gmra.mrb[8].mxu1 %vm289_vm1, %v1312_v16  ;;  %1221 = vmatmul.mubr.msk.bf16.vlgmr.msra.gmra.mrb[0].mxu0 %vm289_vm1, %v1313_v17 }
  0x25   : > { %1196 = vmatprep.mubr.msk.bf16.mxu1 %vm289_vm1, %v1314_v18  ;;  %1224 = vmatprep.mubr.msk.bf16.mxu0 %vm289_vm1, %v1315_v19 }
  0x2c   : > { %1197 = vmatmul.mubr.msk.bf16.gmra.mrb[12].mxu1 %vm289_vm1, %v1316_v20  ;;  %1225 = vmatmul.mubr.msk.bf16.gmra.mrb[4].mxu0 %vm289_vm1, %v1317_v21 }
  0x2d   : > { %1210 = vmatprep.mubr.msk.bf16.mxu1 %vm289_vm1, %v1318_v22  ;;  %1228 = vmatprep.mubr.msk.bf16.mxu0 %vm289_vm1, %v1319_v23 }
  0x34   : > { %1211 = vmatmul.mubr.msk.bf16.vlgmr.msra.gmra.mrb[8].mxu1 %vm289_vm1, %v1320_v24  ;;  %1229 = vmatmul.mubr.msk.bf16.gmra.mrb[8].mxu0 %vm289_vm1, %v1321_v25 }
  0x35   : > { %1214 = vmatprep.mubr.msk.bf16.mxu1 %vm289_vm1, %v1322_v26  ;;  %1232 = vmatprep.mubr.msk.bf16.mxu0 %vm289_vm1, %v1323_v27 }
  0x3c   : > { %1215 = vmatmul.mubr.msk.bf16.gmra.mrb[12].mxu1 %vm289_vm1, %v1324_v28  ;;  %1233 = vmatmul.mubr.msk.bf16.gmra.mrb[12].mxu0 %vm289_vm1, %v1325_v29 }
  0xe7   : > { %v1186_v30 = vpop.f32.mrb[0].mxu1 }
  0xe8   : > { %v352_v31 = vpop.f32.mrb[1].mxu1 }
  0xe9   : > { %v1187_v32 = vpop.f32.mrb[2].mxu1 }
  0xea   : > { %v355_v33 = vpop.f32.mrb[3].mxu1 }
  0xef   : > { %v1190_v34 = vpop.f32.mrb[4].mxu1 }
  0xf0   : > { %v368_v35 = vpop.f32.mrb[5].mxu1 }
  0xf1   : > { %v1191_v36 = vpop.f32.mrb[6].mxu1 }
  0xf2   : > { %v371_v37 = vpop.f32.mrb[7].mxu1 }
  0xf7   : > { %v1222_v38 = vpop.f32.mrb[0].mxu0 }
  0xf8   : > { %v1238_v40 = vadd.f32 %v1222_v38, %v1186_v30  ;;  %v792_v41 = vpop.f32.mrb[1].mxu0 }
  0xf9   : > { %v1239_v43 = vadd.f32 %v792_v41, %v352_v31  ;;  %v1223_v44 = vpop.f32.mrb[2].mxu0 }
  0xfa   : > { %v926_v45 = vmul.f32 %v1238_v40, %v1463_v39  ;;  %v1240_v46 = vadd.f32 %v1223_v44, %v1187_v32  ;;  %v795_v47 = vpop.f32.mrb[3].mxu0 }
  0xfb   : > { %v924_v48 = vmul.f32 %v1239_v43, %v1463_v39  ;;  %v1241_v49 = vadd.f32 %v795_v47, %v355_v33 }
  0xfc   : > { %v947_v50 = vadd.f32 %v1469_v42, %v926_v45  ;;  %v927_v51 = vmul.f32 %v1240_v46, %v1463_v39 }
  0xfd   : > { %v945_v52 = vadd.f32 %v1469_v42, %v924_v48  ;;  %v925_v53 = vmul.f32 %v1241_v49, %v1463_v39 }
  0xfe   : > { %963 = vst [vmem:[%s1475_s6 + $0x10] sm:$0xff] %v947_v50  ;;  %v948_v54 = vadd.f32 %v1469_v42, %v927_v51 }
  0xff   : > { %961 = vst [vmem:[%s1475_s6] sm:$0xff] %v945_v52  ;;  %v946_v55 = vadd.f32 %v1469_v42, %v925_v53  ;;  %v1226_v56 = vpop.f32.mrb[4].mxu0 }
 0x100   : > { %964 = vst [vmem:[%s1475_s6 + $0x18] sm:$0xff] %v948_v54  ;;  %v1242_v57 = vadd.f32 %v1226_v56, %v1190_v34  ;;  %v808_v58 = vpop.f32.mrb[5].mxu0 }
 0x101   : > { %962 = vst [vmem:[%s1475_s6 + $0x8] sm:$0xff] %v946_v55  ;;  %v1243_v59 = vadd.f32 %v808_v58, %v368_v35  ;;  %v1227_v60 = vpop.f32.mrb[6].mxu0 }
 0x102   : > { %v930_v61 = vmul.f32 %v1242_v57, %v1463_v39  ;;  %v1244_v62 = vadd.f32 %v1227_v60, %v1191_v36  ;;  %v811_v63 = vpop.f32.mrb[7].mxu0 }
 0x103   : > { %v928_v0 = vmul.f32 %v1243_v59, %v1463_v39  ;;  %v1245_v1 = vadd.f32 %v811_v63, %v371_v37 }
 0x104   : > { %v951_v2 = vadd.f32 %v1469_v42, %v930_v61  ;;  %v931_v3 = vmul.f32 %v1244_v62, %v1463_v39 }
 0x105   : > { %v949_v4 = vadd.f32 %v1469_v42, %v928_v0  ;;  %v929_v5 = vmul.f32 %v1245_v1, %v1463_v39 }
 0x106   : > { %967 = vst [vmem:[%s1475_s6 + $0x30] sm:$0xff] %v951_v2  ;;  %v952_v6 = vadd.f32 %v1469_v42, %v931_v3 }
 0x107   : > { %v1212_v7 = vpop.f32.mrb[8].mxu1  ;;  %965 = vst [vmem:[%s1475_s6 + $0x20] sm:$0xff] %v949_v4  ;;  %v950_v8 = vadd.f32 %v1469_v42, %v929_v5  ;;  %v1230_v9 = vpop.f32.mrb[8].mxu0 }
 0x108   : > { %v588_v10 = vpop.f32.mrb[9].mxu1  ;;  %968 = vst [vmem:[%s1475_s6 + $0x38] sm:$0xff] %v952_v6  ;;  %v1246_v11 = vadd.f32 %v1230_v9, %v1212_v7  ;;  %v824_v12 = vpop.f32.mrb[9].mxu0 }
 0x109   : > { %v1213_v13 = vpop.f32.mrb[10].mxu1  ;;  %966 = vst [vmem:[%s1475_s6 + $0x28] sm:$0xff] %v950_v8  ;;  %v1247_v14 = vadd.f32 %v824_v12, %v588_v10  ;;  %v1231_v15 = vpop.f32.mrb[10].mxu0 }
 0x10a   : > { %v591_v16 = vpop.f32.mrb[11].mxu1  ;;  %v934_v17 = vmul.f32 %v1246_v11, %v1463_v39  ;;  %v1248_v18 = vadd.f32 %v1231_v15, %v1213_v13  ;;  %v827_v19 = vpop.f32.mrb[11].mxu0 }
 0x10b   : > { %v932_v20 = vmul.f32 %v1247_v14, %v1463_v39  ;;  %v1249_v21 = vadd.f32 %v827_v19, %v591_v16 }
 0x10c   : > { %v955_v22 = vadd.f32 %v1469_v42, %v934_v17  ;;  %v935_v23 = vmul.f32 %v1248_v18, %v1463_v39 }
 0x10d   : > { %v953_v24 = vadd.f32 %v1469_v42, %v932_v20  ;;  %v933_v25 = vmul.f32 %v1249_v21, %v1463_v39 }
 0x10e   : > { %971 = vst [vmem:[%s1475_s6 + $0x50] sm:$0xff] %v955_v22  ;;  %v956_v26 = vadd.f32 %v1469_v42, %v935_v23 }
 0x10f   : > { %v1216_v27 = vpop.f32.mrb[12].mxu1  ;;  %969 = vst [vmem:[%s1475_s6 + $0x40] sm:$0xff] %v953_v24  ;;  %v954_v28 = vadd.f32 %v1469_v42, %v933_v25  ;;  %v1234_v29 = vpop.f32.mrb[12].mxu0 }
 0x110   : > { %v604_v30 = vpop.f32.mrb[13].mxu1  ;;  %972 = vst [vmem:[%s1475_s6 + $0x58] sm:$0xff] %v956_v26  ;;  %v1250_v31 = vadd.f32 %v1234_v29, %v1216_v27  ;;  %v840_v32 = vpop.f32.mrb[13].mxu0 }
 0x111   : > { %v1217_v33 = vpop.f32.mrb[14].mxu1  ;;  %970 = vst [vmem:[%s1475_s6 + $0x48] sm:$0xff] %v954_v28  ;;  %v1251_v34 = vadd.f32 %v840_v32, %v604_v30  ;;  %v1235_v35 = vpop.f32.mrb[14].mxu0 }
 0x112   : > { %v607_v36 = vpop.f32.mrb[15].mxu1  ;;  %v938_v37 = vmul.f32 %v1250_v31, %v1463_v39  ;;  %v1252_v38 = vadd.f32 %v1235_v35, %v1217_v33  ;;  %v843_v40 = vpop.f32.mrb[15].mxu0 }
 0x113   : > { %v936_v41 = vmul.f32 %v1251_v34, %v1463_v39  ;;  %v1253_v43 = vadd.f32 %v843_v40, %v607_v36 }
 0x114   : > { %v959_v44 = vadd.f32 %v1469_v42, %v938_v37  ;;  %v939_v45 = vmul.f32 %v1252_v38, %v1463_v39 }
 0x115   : > { %v957_v46 = vadd.f32 %v1469_v42, %v936_v41  ;;  %v937_v47 = vmul.f32 %v1253_v43, %v1463_v39 }
 0x116   : > { %975 = vst [vmem:[%s1475_s6 + $0x70] sm:$0xff] %v959_v44  ;;  %v960_v48 = vadd.f32 %v1469_v42, %v939_v45 }
 0x117   : > { %973 = vst [vmem:[%s1475_s6 + $0x60] sm:$0xff] %v957_v46  ;;  %v958_v49 = vadd.f32 %v1469_v42, %v937_v47 }
 0x118   : > { %976 = vst [vmem:[%s1475_s6 + $0x78] sm:$0xff] %v960_v48 }
 0x119   : > { %974 = vst [vmem:[%s1475_s6 + $0x68] sm:$0xff] %v958_v49 }
 0x11a PF: > { %s13_s14 = sadd.s32 1, %s1348_s14   ;;  %s1537_s12 = smov %s1344_s13 }
 0x11b   : > { %p10_p5 = scmp.ge.s32.totalorder %s13_s14, 6   ;;  %s1538_s13 = smov %s1540_s15 }
 0x11d   :  { %12 = sbr.rel (!%p10_p5) target bundleno = 2 (0x2), region = 70 }

</bundles_post_ra>
